<compile_context>
chip_gen: v7x
topology: tpu7x:2x2x1
jax: 0.10.0
libtpu: 0.0.40
codegen_flags: <defaults>
</compile_context>

<pallas_src>
import numpy as np
import jax
import jax.numpy as jnp
from jax import lax
from jax.experimental import pallas as pl
from jax.experimental.pallas import tpu as pltpu


def attention_mil_kernel(bag_row_ref,     # VMEM (T, 1) int32: bag id per row, -1 = padding
                         bag_col_ref,     # VMEM (1, T) int32: same ids, lane-oriented
                         x_ref,           # VMEM (T, L) f32: flat instances (all bags)
                         w1_ref, b1_ref,  # (L, D), (1, D)
                         w2_ref,          # (D, 1)
                         wc_ref, bc_ref,  # (L, C), (1, C)
                         out_ref):        # (num_bags, C)
    T = x_ref.shape[0]
    num_bags = out_ref.shape[0]

    x = x_ref[...]                              # (T, L)
    bag_row = bag_row_ref[...]                  # (T, 1)
    bag_col = bag_col_ref[...]                  # (1, T)

    # --- attention MLP (MXU) over all instances of all bags at once ---
    hidden = jnp.tanh(
        jnp.dot(x, w1_ref[...], preferred_element_type=jnp.float32) + b1_ref[...]
    )                                           # (T, D)
    s = jnp.dot(hidden, w2_ref[...],
                preferred_element_type=jnp.float32)          # (T, 1)

    # --- per-bag max for a numerically stable softmax (row orientation only,
    #     so no transposes are needed anywhere in the kernel) ---
    sel_t = bag_row == lax.broadcasted_iota(jnp.int32, (T, num_bags), 1)   # (T, NB) bool
    s_tb = jnp.where(sel_t, s, jnp.float32(-1e30))                         # (T, NB)
    m_b = jnp.max(s_tb, axis=0, keepdims=True)                             # (1, NB) sublane reduce
    m_row = jnp.sum(jnp.where(sel_t, m_b, 0.0), axis=1, keepdims=True)     # (T, 1) lane reduce

    valid = bag_row >= 0                                                   # (T, 1)
    e = jnp.where(valid, jnp.exp(s - m_row), 0.0)                          # (T, 1), EUP exp

    # --- bag-selection matrix: one-hot bag membership, zero on padding rows ---
    sel_f = (lax.broadcasted_iota(jnp.int32, (num_bags, T), 0) == bag_col
             ).astype(jnp.float32)                                         # (NB, T)

    # --- attention-weighted pooling + softmax denominators on the MXU ---
    xe = x * e                                                             # (T, L)
    m_unnorm = jnp.dot(sel_f, xe, preferred_element_type=jnp.float32)      # (NB, L)
    denom = jnp.dot(sel_f, e, preferred_element_type=jnp.float32)          # (NB, 1)
    m_bag = m_unnorm / denom                      # one divide per bag row (hoisted)

    # --- classifier ---
    y = jnp.dot(m_bag, wc_ref[...], preferred_element_type=jnp.float32) + bc_ref[...]
    out_ref[...] = y.astype(out_ref.dtype)        # single resident-block write


def attention_mil_forward(x, corelen, params):
    """x: (N, L) float32 flat instances; corelen: bag start indices (like the PyTorch module)."""
    w1, b1, w2, b2, wc, bc = params   # b2 intentionally unused: softmax is shift-invariant
    N, L = x.shape
    C = wc.shape[1]

    starts = [int(s) for s in np.asarray(corelen)]
    ends = starts[1:] + [N]
    num_bags = len(starts)
    assert num_bags >= 1

    # Host-side metadata only (no per-bag pad/stack of the features):
    # pad the flat instance array to a sublane multiple and tag each row with its bag id.
    T = int(-(-N // 8) * 8)
    bag_ids = np.full((T,), -1, dtype=np.int32)
    for b, (s, e) in enumerate(zip(starts, ends)):
        assert e > s, "AttentionMIL: empty bag would produce NaN"
        bag_ids[s:e] = b
    bag_row = jnp.asarray(bag_ids.reshape(T, 1))
    bag_col = jnp.asarray(bag_ids.reshape(1, T))
    x_flat = jnp.pad(x, ((0, T - N), (0, 0)))

    vmem = lambda: pl.BlockSpec(memory_space=pltpu.MemorySpace.VMEM)
    out = pl.pallas_call(
        attention_mil_kernel,
        out_shape=jax.ShapeDtypeStruct((num_bags, C), jnp.float32),
        in_specs=[vmem() for _ in range(8)],
        out_specs=vmem(),
    )(bag_row, bag_col, x_flat, w1, b1, w2, wc, bc)
    return out


def attention_mil_reference(x, corelen, params):
    """Pure-JAX reference reproducing the PyTorch forward exactly (including b2)."""
    w1, b1, w2, b2, wc, bc = params
    starts = [int(s) for s in np.asarray(corelen)]
    ends = starts[1:] + [x.shape[0]]
    outs = []
    for s, e in zip(starts, ends):
        h = x[s:e]                                         # (n, L)
        a = jnp.tanh(h @ w1 + b1) @ w2 + b2                # (n, 1)
        a = jax.nn.softmax(a.T, axis=1)                    # (1, n)
        m = a @ h                                          # (1, L)
        outs.append(m @ wc + bc)                           # (1, C)
    return jnp.concatenate(outs, axis=0)


def init_params(key, L, D, C):
    ks = jax.random.split(key, 6)
    w1 = jax.random.normal(ks[0], (L, D), jnp.float32) * 0.05
    b1 = jax.random.normal(ks[1], (1, D), jnp.float32) * 0.05
    w2 = jax.random.normal(ks[2], (D, 1), jnp.float32) * 0.05
    b2 = jax.random.normal(ks[3], (1, 1), jnp.float32) * 0.05   # no-op for softmax
    wc = jax.random.normal(ks[4], (L, C), jnp.float32) * 0.05
    bc = jax.random.normal(ks[5], (1, C), jnp.float32) * 0.05
    return (w1, b1, w2, b2, wc, bc)


if __name__ == "__main__":
    key = jax.random.PRNGKey(0)
    L = 32            # input_dim
    D = 128           # attention hidden dim (fixed in the module)
    C = 4             # num_classes
    N = 20            # total number of instances across all bags

    kx, kp = jax.random.split(key)
    x = jax.random.normal(kx, (N, L), jnp.float32)
    corelen = np.array([0, 7, 13])    # bag start indices -> lengths 7, 6, 7
    params = init_params(kp, L, D, C)

    y = attention_mil_forward(x, corelen, params)
    y = jax.block_until_ready(y)

    y_ref = attention_mil_reference(x, corelen, params)
    np.testing.assert_allclose(np.asarray(y), np.asarray(y_ref), rtol=1e-4, atol=1e-4)

    print("KERNEL_OK")
</pallas_src>

<mosaic_0001>
module attributes {stable_mosaic.version = 11 : i64} {
  func.func @attention_mil_kernel(%arg0: memref<24x1xi32, #tpu.memory_space<vmem>>, %arg1: memref<1x24xi32, #tpu.memory_space<vmem>>, %arg2: memref<24x32xf32, #tpu.memory_space<vmem>>, %arg3: memref<32x128xf32, #tpu.memory_space<vmem>>, %arg4: memref<1x128xf32, #tpu.memory_space<vmem>>, %arg5: memref<128x1xf32, #tpu.memory_space<vmem>>, %arg6: memref<32x4xf32, #tpu.memory_space<vmem>>, %arg7: memref<1x4xf32, #tpu.memory_space<vmem>>, %arg8: memref<3x4xf32, #tpu.memory_space<vmem>>) attributes {dimension_semantics = [], scalar_prefetch = 0 : i64, scratch_operands = 0 : i64, tpu.core_type = #tpu.core_type<tc>} {
    %c0 = arith.constant 0 : index
    %c0_0 = arith.constant 0 : index
    %0 = vector.load %arg2[%c0, %c0_0] : memref<24x32xf32, #tpu.memory_space<vmem>>, vector<24x32xf32>
    %c0_1 = arith.constant 0 : index
    %c0_2 = arith.constant 0 : index
    %1 = vector.load %arg0[%c0_1, %c0_2] : memref<24x1xi32, #tpu.memory_space<vmem>>, vector<24x1xi32>
    %c0_3 = arith.constant 0 : index
    %c0_4 = arith.constant 0 : index
    %2 = vector.load %arg1[%c0_3, %c0_4] : memref<1x24xi32, #tpu.memory_space<vmem>>, vector<1x24xi32>
    %c0_5 = arith.constant 0 : index
    %c0_6 = arith.constant 0 : index
    %3 = vector.load %arg3[%c0_5, %c0_6] : memref<32x128xf32, #tpu.memory_space<vmem>>, vector<32x128xf32>
    %cst = arith.constant dense<0.000000e+00> : vector<24x128xf32>
    %4 = tpu.matmul %0, %3, %cst {dimension_numbers = #tpu.dot_dimension_numbers<[1], [0], [0], [1], [0, 0, 1, 1], [], []>} : vector<24x32xf32>, vector<32x128xf32>, vector<24x128xf32> -> vector<24x128xf32>
    %c0_7 = arith.constant 0 : index
    %c0_8 = arith.constant 0 : index
    %5 = vector.load %arg4[%c0_7, %c0_8] : memref<1x128xf32, #tpu.memory_space<vmem>>, vector<1x128xf32>
    %6 = vector.broadcast %5 : vector<1x128xf32> to vector<24x128xf32>
    %7 = arith.addf %4, %6 : vector<24x128xf32>
    %8 = math.tanh %7 : vector<24x128xf32>
    %c0_9 = arith.constant 0 : index
    %c0_10 = arith.constant 0 : index
    %9 = vector.load %arg5[%c0_9, %c0_10] : memref<128x1xf32, #tpu.memory_space<vmem>>, vector<128x1xf32>
    %cst_11 = arith.constant dense<0.000000e+00> : vector<24x1xf32>
    %10 = tpu.matmul %8, %9, %cst_11 {dimension_numbers = #tpu.dot_dimension_numbers<[1], [0], [0], [1], [0, 0, 1, 1], [], []>} : vector<24x128xf32>, vector<128x1xf32>, vector<24x1xf32> -> vector<24x1xf32>
    %11 = tpu.iota {dimensions = array<i32: 1>} : vector<24x3xi32>
    %12 = vector.broadcast %1 : vector<24x1xi32> to vector<24x3xi32>
    %13 = arith.cmpi eq, %12, %11 : vector<24x3xi32>
    %cst_12 = arith.constant -1.000000e+30 : f32
    %14 = vector.shape_cast %10 : vector<24x1xf32> to vector<24x1xf32>
    %15 = vector.broadcast %14 : vector<24x1xf32> to vector<24x3xf32>
    %16 = vector.broadcast %cst_12 : f32 to vector<24x3xf32>
    %17 = arith.select %13, %15, %16 : vector<24x3xi1>, vector<24x3xf32>
    %cst_13 = arith.constant dense<0xFF800000> : vector<3xf32>
    %18 = vector.multi_reduction <maximumf>, %17, %cst_13 [0] : vector<24x3xf32> to vector<3xf32>
    %19 = vector.shape_cast %18 : vector<3xf32> to vector<1x3xf32>
    %cst_14 = arith.constant 0.000000e+00 : f32
    %20 = vector.shape_cast %19 : vector<1x3xf32> to vector<1x3xf32>
    %21 = vector.broadcast %20 : vector<1x3xf32> to vector<24x3xf32>
    %22 = vector.broadcast %cst_14 : f32 to vector<24x3xf32>
    %23 = arith.select %13, %21, %22 : vector<24x3xi1>, vector<24x3xf32>
    %cst_15 = arith.constant dense<0.000000e+00> : vector<24xf32>
    %24 = vector.multi_reduction <add>, %23, %cst_15 [1] : vector<24x3xf32> to vector<24xf32>
    %25 = vector.shape_cast %24 : vector<24xf32> to vector<24x1xf32>
    %c0_i32 = arith.constant 0 : i32
    %26 = vector.broadcast %c0_i32 : i32 to vector<24x1xi32>
    %27 = arith.cmpi sge, %1, %26 : vector<24x1xi32>
    %28 = arith.subf %10, %25 : vector<24x1xf32>
    %29 = math.exp %28 : vector<24x1xf32>
    %cst_16 = arith.constant 0.000000e+00 : f32
    %30 = vector.broadcast %cst_16 : f32 to vector<24x1xf32>
    %31 = arith.select %27, %29, %30 : vector<24x1xi1>, vector<24x1xf32>
    %32 = tpu.iota {dimensions = array<i32: 0>} : vector<3x24xi32>
    %33 = vector.broadcast %2 : vector<1x24xi32> to vector<3x24xi32>
    %34 = arith.cmpi eq, %32, %33 : vector<3x24xi32>
    %35 = arith.extui %34 : vector<3x24xi1> to vector<3x24xi32>
    %36 = arith.sitofp %35 : vector<3x24xi32> to vector<3x24xf32>
    %37 = vector.broadcast %31 : vector<24x1xf32> to vector<24x32xf32>
    %38 = arith.mulf %0, %37 : vector<24x32xf32>
    %cst_17 = arith.constant dense<0.000000e+00> : vector<3x32xf32>
    %39 = tpu.matmul %36, %38, %cst_17 {dimension_numbers = #tpu.dot_dimension_numbers<[1], [0], [0], [1], [0, 0, 1, 1], [], []>} : vector<3x24xf32>, vector<24x32xf32>, vector<3x32xf32> -> vector<3x32xf32>
    %cst_18 = arith.constant dense<0.000000e+00> : vector<3x1xf32>
    %40 = tpu.matmul %36, %31, %cst_18 {dimension_numbers = #tpu.dot_dimension_numbers<[1], [0], [0], [1], [0, 0, 1, 1], [], []>} : vector<3x24xf32>, vector<24x1xf32>, vector<3x1xf32> -> vector<3x1xf32>
    %41 = vector.broadcast %40 : vector<3x1xf32> to vector<3x32xf32>
    %42 = arith.divf %39, %41 : vector<3x32xf32>
    %c0_19 = arith.constant 0 : index
    %c0_20 = arith.constant 0 : index
    %43 = vector.load %arg6[%c0_19, %c0_20] : memref<32x4xf32, #tpu.memory_space<vmem>>, vector<32x4xf32>
    %cst_21 = arith.constant dense<0.000000e+00> : vector<3x4xf32>
    %44 = tpu.matmul %42, %43, %cst_21 {dimension_numbers = #tpu.dot_dimension_numbers<[1], [0], [0], [1], [0, 0, 1, 1], [], []>} : vector<3x32xf32>, vector<32x4xf32>, vector<3x4xf32> -> vector<3x4xf32>
    %c0_22 = arith.constant 0 : index
    %c0_23 = arith.constant 0 : index
    %45 = vector.load %arg7[%c0_22, %c0_23] : memref<1x4xf32, #tpu.memory_space<vmem>>, vector<1x4xf32>
    %46 = vector.broadcast %45 : vector<1x4xf32> to vector<3x4xf32>
    %47 = arith.addf %44, %46 : vector<3x4xf32>
    %c0_24 = arith.constant 0 : index
    %c0_25 = arith.constant 0 : index
    %48 = vector.load %arg8[%c0_24, %c0_25] : memref<3x4xf32, #tpu.memory_space<vmem>>, vector<3x4xf32>
    tpu.vector_store %arg8[%c0_24, %c0_25], %47 {strides = array<i32>} : memref<3x4xf32, #tpu.memory_space<vmem>>, vector<3x4xf32>,
    return
  }
}

</mosaic_0001>

<bundles_post_ra>
// kernel: tpu_custom_call.1
= control target key start
LH: loop header
LB: loop body
LE: loop exit
PB: predicated region body
PF: predicated region fallthrough
CT: control target
= control target key end

     0   :  { %v813_v3 = vmov 0.0|0.0   ;;  %vm814_vm0 = vmmov 0   ;;  %v815_v6 = vmov 0.0   ;;  %s1061_s0 = inlined_call_operand.vmem [shape: s32[24,1], index: 0, kind: input, shape index: {}]   ;;  %s1062_s1 = inlined_call_operand.vmem [shape: s32[1,24], index: 1, kind: input, shape index: {}]   ;;  %s1063_s2 = inlined_call_operand.vmem [shape: f32[24,32], index: 2, kind: input, shape index: {}]   ;;  %s1064_s3 = inlined_call_operand.vmem [shape: f32[32,128], index: 3, kind: input, shape index: {}]   ;;  %s1065_s4 = inlined_call_operand.vmem [shape: f32[1,128], index: 4, kind: input, shape index: {}]   ;;  %s1066_s5 = inlined_call_operand.vmem [shape: f32[128,1], index: 5, kind: input, shape index: {}]   ;;  %s1067_s6 = inlined_call_operand.vmem [shape: f32[32,4], index: 6, kind: input, shape index: {}]   ;;  %s1068_s7 = inlined_call_operand.vmem [shape: f32[1,4], index: 7, kind: input, shape index: {}]   ;;  %s1069_s8 = inlined_call_operand.hbm [shape: f32[3,4], index: 8, kind: output, shape index: {}]  }
   0x1   :  { %v37_v0 = vld [vmem:[%s1064_s3] sm:$0xff]  ;;  %v38_v1 = vld [vmem:[%s1064_s3 + $0x8] sm:$0xff]  ;;  %v39_v2 = vld [vmem:[%s1064_s3 + $0x10] sm:$0xff]  ;;  %725 = vmatprep.subr.bf16.mxu0 %v813_v3  ;;  %646 = vmatprep.mubr.msk.f32.mxu0 %vm814_vm0, %v815_v6 }
   0x2   :  { %v726_v4 = vpack.c.bf16 %v38_v1, %v37_v0  ;;  %v40_v5 = vld [vmem:[%s1064_s3 + $0x18] sm:$0xff]  ;;  %731 = vmatprep.subr.bf16.mxu1 %v813_v3  ;;  %v141_v7 = vld [vmem:[%s1066_s5] sm:$0xff]  ;;  %v142_v8 = vld [vmem:[%s1066_s5 + $0x8] sm:$0xff]  ;;  %687 = vmatprep.mubr.msk.f32.mxu1 %vm814_vm0, %v815_v6 }
   0x3   :  { %v729_v9 = vpack.c.bf16 %v40_v5, %v39_v2  ;;  %v732_v10 = vpack.c.bf16 %v142_v8, %v141_v7  ;;  %v143_v11 = vld [vmem:[%s1066_s5 + $0x10] sm:$0xff]  ;;  %v144_v12 = vld [vmem:[%s1066_s5 + $0x18] sm:$0xff]  ;;  %v145_v14 = vld [vmem:[%s1066_s5 + $0x20] sm:$0xff] }
   0x4   :  { %727 = vmatpush3.bf16.msra.mxu0 %v726_v4  ;;  %v735_v13 = vpack.c.bf16 %v144_v12, %v143_v11  ;;  %v146_v15 = vld [vmem:[%s1066_s5 + $0x28] sm:$0xff] }
   0x5   :  { %728 = vmatprep.subr.bf16.mxu0 %v813_v3  ;;  %733 = vmatpush3.bf16.msra.mxu1 %v732_v10 }
   0x6   :  { %734 = vmatprep.subr.bf16.mxu1 %v813_v3 }
   0x7   :  { %13 = vsyncpa [#allocation3], 0  ;;  %v904_v16 = vld [vmem:[%s1063_s2] sm:$0xff]  ;;  %vm48_vm1 = vcmask 261120   ;;  %v738_v17 = vpack.c.bf16 %v146_v15, %v145_v14  ;;  %v147_v18 = vld [vmem:[%s1066_s5 + $0x30] sm:$0xff]  ;;  %v816_v36 = vmov 0   ;;  %v237_v59 = vlaneseq }
   0x8   :  { %730 = vmatpush3.bf16.msra.mxu0 %v729_v9  ;;  %v148_v19 = vld [vmem:[%s1066_s5 + $0x38] sm:$0xff]  ;;  %v921_v20 = vld [vmem:[%s1063_s2 + $0x8] sm:$0xff]  ;;  %v149_v22 = vld [vmem:[%s1066_s5 + $0x40] sm:$0xff]  ;;  %773 = vset.pattern.permute.xlu0 %v816_v36  ;;  %vm269_vm4 = vcmask 23552   ;;  %vm335_vm10 = vcmask 195584   ;;  %s817_s18 = smov [#allocation2]  }
   0x9   :  { %755 = vmatprep.subr.bf16.mxu0 %v813_v3  ;;  %736 = vmatpush3.bf16.msra.mxu1 %v735_v13  ;;  %v741_v21 = vpack.c.bf16 %v148_v19, %v147_v18  ;;  %v150_v23 = vld [vmem:[%s1066_s5 + $0x48] sm:$0xff]  ;;  %v937_v24 = vld [vmem:[%s1063_s2 + $0x10] sm:$0xff]  ;;  %v152_v27 = vld [vmem:[%s1066_s5 + $0x58] sm:$0xff]  ;;  %v238_v60 = vand.u32 127, %v237_v59  ;;  %s578_s19 = sshll.u32 %s817_s18, 4  ;;  %vm570_vm12 = vcmask 26624   ;;  %s579_s19 = int_to_ptr.vmem [resolvable:$true] %s578_s19 }
   0xa   :  { %737 = vmatprep.subr.bf16.mxu1 %v813_v3  ;;  %v744_v25 = vpack.c.bf16 %v150_v23, %v149_v22  ;;  %v151_v26 = vld [vmem:[%s1066_s5 + $0x50] sm:$0xff]  ;;  %v153_v29 = vld [vmem:[%s1066_s5 + $0x60] sm:$0xff]  ;;  %v154_v30 = vld [vmem:[%s1066_s5 + $0x68] sm:$0xff]  ;;  %774 = vset.pattern.permute.xlu1 %v816_v36  ;;  %p794_p1 = scmp.lt.s32.totalorder %s579_s19, %s579_s19 }
   0xb   :  { %647 = vmatmul.mubr.msk.f32.vlgmr.msra.gmra.mrb[0].mxu0 %vm48_vm1, %v904_v16  ;;  %v747_v28 = vpack.c.bf16 %v152_v27, %v151_v26  ;;  %v750_v31 = vpack.c.bf16 %v154_v30, %v153_v29  ;;  %v155_v32 = vld [vmem:[%s1066_s5 + $0x70] sm:$0xff]  ;;  %v156_v33 = vld [vmem:[%s1066_s5 + $0x78] sm:$0xff]  ;;  %v968_v35 = vld [vmem:[%s1061_s0] sm:$0xff] }
   0xc   :  { %649 = vmatprep.mubr.msk.f32.mxu0 %vm814_vm0, %v815_v6  ;;  %v753_v34 = vpack.c.bf16 %v156_v33, %v155_v32  ;;  %240 = vperm.xlu0 %773, %v968_v35   ;;  %v974_v37 = vld [vmem:[%s1061_s0 + $0x8] sm:$0xff]  ;;  %v980_v38 = vld [vmem:[%s1061_s0 + $0x10] sm:$0xff]  ;;  %v586_v39 = vld [vmem:[%s1065_s4] ss:$0 sm:$0xff]  ;;  %vm293_vm7 = vcmp.ge.s32.totalorder %v968_v35, 0 }
   0xd   :  { %739 = vmatpush3.bf16.msra.mxu1 %v738_v17  ;;  %vm294_vm6 = vcmp.ge.s32.totalorder %v974_v37, 0  ;;  %vm295_vm8 = vcmp.ge.s32.totalorder %v980_v38, 0 }
   0xe   :  { %740 = vmatprep.subr.bf16.mxu1 %v813_v3  ;;  %vm760_vm11 = vmpackc.low %vm294_vm6, %vm293_vm7 }
   0xf   :  { %650 = vmatmul.mubr.msk.f32.gmra.mrb[2].mxu0 %vm48_vm1, %v921_v20 }
  0x10   :  { %652 = vmatprep.mubr.msk.f32.mxu0 %vm814_vm0, %v815_v6  ;;  %243 = vperm.xlu0 %773, %v974_v37   ;;  %v486_v37 = vld [vmem:[%s1067_s6] sm:$0xff] }
  0x11   :  { %742 = vmatpush3.bf16.msra.mxu1 %v741_v21 }
  0x12   :  { %743 = vmatprep.subr.bf16.mxu1 %v813_v3 }
  0x13   :  { %653 = vmatmul.mubr.msk.f32.gmra.mrb[4].mxu0 %vm48_vm1, %v937_v24 }
  0x14   :  { %702 = vmatprep.mubr.msk.f32.mxu0 %vm814_vm0, %v815_v6  ;;  %246 = vperm.xlu0 %773, %v980_v38   ;;  %v487_v38 = vld [vmem:[%s1067_s6 + $0x8] sm:$0xff] }
  0x15   :  { %745 = vmatpush3.bf16.msra.mxu1 %v744_v25 }
  0x16   :  { %746 = vmatprep.subr.bf16.mxu1 %v813_v3 }
  0x19   :  { %748 = vmatpush3.bf16.msra.mxu1 %v747_v28 }
  0x1a   :  { %749 = vmatprep.subr.bf16.mxu1 %v813_v3 }
  0x1d   :  { %751 = vmatpush3.bf16.msra.mxu1 %v750_v31 }
  0x1e   :  { %752 = vmatprep.subr.bf16.mxu1 %v813_v3 }
  0x21   :  { %754 = vmatpush3.bf16.msra.mxu1 %v753_v34 }
  0x8b   :  { %v241_v58 = vpop.permute.xlu0 %240 }
  0x8c   :  { %vm248_vm2 = vcmp.eq.s32.totalorder %v241_v58, %v238_v60 }
  0x8f   :  { %v244_v61 = vpop.permute.xlu0 %243 }
  0x90   :  { %vm249_vm3 = vcmp.eq.s32.totalorder %v244_v61, %v238_v60 }
  0x93   :  { %v247_v0 = vpop.permute.xlu0 %246 }
  0x94   :  { %vm250_vm5 = vcmp.eq.s32.totalorder %v247_v0, %v238_v60 }
  0xde   :  { %v124_v40 = vpop.f32.mrb[0].mxu0 }
  0xdf   :  { %v125_v41 = vadd.f32 %v586_v39, %v124_v40  ;;  %v648_v42 = vpop.f32.mrb[1].mxu0 }
  0xe1   :  { %775 = vtanh.f32 %v125_v41 }
  0xe2   :  { %v129_v43 = vpop.f32.mrb[2].mxu0 }
  0xe3   :  { %v130_v44 = vadd.f32 %v586_v39, %v129_v43  ;;  %v651_v45 = vpop.f32.mrb[3].mxu0 }
  0xe5   :  { %777 = vtanh.f32 %v130_v44 }
  0xe6   :  { %v134_v46 = vpop.f32.mrb[4].mxu0 }
  0xe7   :  { %v135_v47 = vadd.f32 %v586_v39, %v134_v46  ;;  %v654_v48 = vpop.f32.mrb[5].mxu0 }
  0xe9   :  { %779 = vtanh.f32 %v135_v47  ;;  %v309_v47 = vshrl.u32 %v237_v59, 7 }
  0xeb   :  { %v776_v49 = vpop.eup %775 }
  0xec   :  { %688 = vmatmul.mubr.f32.vlgmr.msra.gmra.mrb[0].mxu1 %v776_v49 }
  0xed   :  { %690 = vmatprep.mubr.msk.f32.mxu1 %vm814_vm0, %v815_v6 }
  0xef   :  { %v778_v50 = vpop.eup %777 }
  0xf0   :  { %691 = vmatmul.mubr.f32.gmra.mrb[2].mxu1 %v778_v50 }
  0xf1   :  { %693 = vmatprep.mubr.msk.f32.mxu1 %vm814_vm0, %v815_v6 }
  0xf3   :  { %v780_v51 = vpop.eup %779 }
  0xf4   :  { %694 = vmatmul.mubr.f32.gmra.mrb[4].mxu1 %v780_v51  ;;  %v590_v51 = vld [vmem:[%s1062_s1] ss:$0 sm:$0xff] }
  0xf5   :  { %vm314_vm9 = vcmp.eq.s32.totalorder %v309_v47, %v590_v51 }
 0x1bf   :  { %v223_v52 = vpop.f32.mrb[0].mxu1 }
 0x1c0   :  { %253 = vperm.xlu1 %774, %v223_v52   ;;  %v689_v53 = vpop.f32.mrb[1].mxu1 }
 0x1c3   :  { %v228_v54 = vpop.f32.mrb[2].mxu1 }
 0x1c4   :  { %258 = vperm.xlu1 %774, %v228_v54   ;;  %v692_v55 = vpop.f32.mrb[3].mxu1 }
 0x1c5   :  { %v591_v55 = vsel %vm314_vm9, 1.0, %v815_v6 }
 0x1c7   :  { %v233_v56 = vpop.f32.mrb[4].mxu1 }
 0x1c8   :  { %263 = vperm.xlu1 %774, %v233_v56   ;;  %v695_v57 = vpop.f32.mrb[5].mxu1 }
 0x1c9   :  { %v489_v57 = vld [vmem:[%s1067_s6 + $0x18] sm:$0xff] }
 0x23f   :  { %v254_v62 = vpop.permute.xlu1 %253 }
 0x240   :  { %v266_v1 = vsel %vm248_vm2, %v254_v62, -1e+30 }
 0x241   :  { %v270_v5 = vsel %vm269_vm4, %v266_v1, -inf }
 0x243   :  { %v259_v63 = vpop.permute.xlu1 %258 }
 0x244   :  { %v267_v2 = vsel %vm249_vm3, %v259_v63, -1e+30 }
 0x245   :  { %v271_v4 = vsel %vm269_vm4, %v267_v2, -inf }
 0x246   :  { %v273_v8 = vmax.f32 %v270_v5, %v271_v4 }
 0x247   :  { %v264_v7 = vpop.permute.xlu1 %263 }
 0x248   :  { %v268_v9 = vsel %vm250_vm5, %v264_v7, -1e+30 }
 0x249   :  { %v272_v10 = vsel %vm269_vm4, %v268_v9, -inf }
 0x24a   :  { %v274_v11 = vmax.f32 %v273_v8, %v272_v10 }
 0x24c   :  { %v275_v12 = vrot.slane %v274_v11, 4 }
 0x24e   :  { %v276_v13 = vmax.f32 %v274_v11, %v275_v12 }
 0x250   :  { %v277_v14 = vrot.slane %v276_v13, 2 }
 0x252   :  { %v278_v15 = vmax.f32 %v276_v13, %v277_v14 }
 0x254   :  { %v279_v17 = vrot.slane %v278_v15, 1 }
 0x256   :  { %v280_v18 = vmax.f32 %v278_v15, %v279_v17 }
 0x258   :  { %v282_v19 = vsel %vm249_vm3, %v280_v18, 0.0  ;;  %v281_v21 = vsel %vm248_vm2, %v280_v18, 0.0  ;;  %v283_v25 = vsel %vm250_vm5, %v280_v18, 0.0 }
 0x259   :  { %v287_v22 = vsel %vm269_vm4, %v282_v19, 0.0  ;;  %v284_v23 = vsel %vm269_vm4, %v281_v21, 0.0  ;;  %v290_v26 = vsel %vm269_vm4, %v283_v25, 0.0 }
 0x25a   :  { %288 = vadd.xlane.f32.xlu1 %v287_v22  ;;  %285 = vadd.xlane.f32.xlu0 %v284_v23 }
 0x25e   :  { %291 = vadd.xlane.f32.xlu0 %v290_v26 }
 0x2e7   :  { %v289_v27 = vpop.xlane.xlu1 %288  ;;  %v286_v28 = vpop.xlane.xlu0 %285 }
 0x2e8   :  { %v297_v29 = vsub.f32 %v228_v54, %v289_v27  ;;  %v296_v30 = vsub.f32 %v223_v52, %v286_v28 }
 0x2ea   :  { %v301_v31 = vmul.f32 1.442695, %v297_v29  ;;  %v299_v32 = vmul.f32 1.442695, %v296_v30 }
 0x2eb   :  { %v292_v33 = vpop.xlane.xlu0 %291 }
 0x2ec   :  { %781 = vpow2.f32 %v301_v31  ;;  %v298_v34 = vsub.f32 %v233_v56, %v292_v33  ;;  %v763_v56 = vpack.c.bf16 %v487_v38, %v486_v37 }
 0x2ed   :  { %783 = vpow2.f32 %v299_v32 }
 0x2ee   :  { %v303_v36 = vmul.f32 1.442695, %v298_v34 }
 0x2f0   :  { %785 = vpow2.f32 %v303_v36 }
 0x2f6   :  { %v782_v39 = vpop.eup %781 }
 0x2f7   :  { %v784_v40 = vpop.eup %783  ;;  %v306_v41 = vsel %vm294_vm6, %v782_v39, 0.0 }
 0x2f8   :  { %324 = vperm.xlu1 %774, %v306_v41   ;;  %v305_v42 = vsel %vm293_vm7, %v784_v40, 0.0  ;;  %v759_v43 = vpack.c.bf16 %v782_v39, %v784_v40 }
 0x2f9   :  { %319 = vperm.xlu0 %773, %v305_v42  }
 0x2fa   :  { %v786_v44 = vpop.eup %785 }
 0x2fb   :  { %v307_v45 = vsel %vm295_vm8, %v786_v44, 0.0 }
 0x2fc   :  { %329 = vperm.xlu1 %774, %v307_v45  }
 0x377   :  { %v325_v46 = vpop.permute.xlu1 %324 }
 0x378   :  { %v333_v48 = vmul.f32 %v325_v46, %v921_v20  ;;  %v320_v49 = vpop.permute.xlu0 %319 }
 0x379   :  { %v332_v50 = vmul.f32 %v320_v49, %v904_v16 }
 0x37b   :  { %v756_v52 = vpack.c.bf16 %v333_v48, %v332_v50  ;;  %v330_v53 = vpop.permute.xlu1 %329 }
 0x37c   :  { %v334_v54 = vmul.f32 %v330_v53, %v937_v24 }
 0x37d   :  { %757 = vmatpush3.bf16.msra.mxu0 %v756_v52 }
 0x37e   :  { %700 = vmatprep.subr.mxu0 %v815_v6 }
 0x381   :  { %701 = vmatpush3.msra.mxu0 %v334_v54 }
 0x382   :  { %758 = vmatprep.subr.bf16.mxu0 %v813_v3  ;;  %703 = vmatmul.mubr.msk.f32.vlgmr.msra.gmra.mrb[6].mxu0 %vm335_vm10, %v591_v55 }
 0x383   :  { %761 = vmatpush3.bf16.msk.msra.mxu0 %vm760_vm11, %v759_v43  ;;  %711 = vmatprep.mubr.msk.f32.mxu0 %vm814_vm0, %v815_v6 }
 0x384   :  { %709 = vmatprep.subr.mxu0 %v815_v6 }
 0x387   :  { %710 = vmatpush3.msk.msra.mxu0 %vm295_vm8, %v786_v44 }
 0x388   :  { %712 = vmatmul.mubr.msk.f32.vlgmr.msra.gmra.mrb[8].mxu0 %vm335_vm10, %v591_v55  ;;  %762 = vmatprep.subr.bf16.mxu0 %v813_v3 }
 0x389   :  { %722 = vmatprep.mubr.msk.f32.mxu0 %vm814_vm0, %v815_v6  ;;  %764 = vmatpush3.bf16.msra.mxu0 %v763_v56  ;;  %v488_v6 = vld [vmem:[%s1067_s6 + $0x10] sm:$0xff]  ;;  %s789_s6 = scalar_lea.vmem %s579_s19, 64 }
 0x38a   :  { %765 = vmatprep.subr.bf16.mxu0 %v813_v3  ;;  %v766_v58 = vpack.c.bf16 %v489_v57, %v488_v6  ;;  %v597_v3 = vld [vmem:[%s1068_s7] ss:$0 sm:$0xff]  ;;  %p790_p0 = scmp.ne.s32.totalorder %s579_s19, %s789_s6  ;;  %p795_p2 = scmp.lt.s32.totalorder %s789_s6, %s789_s6 }
 0x38c   :  { %p796_p3 = por %p795_p2, %p794_p1 }
 0x38d   :  { %767 = vmatpush3.bf16.msra.mxu0 %v766_v58 }
 0x38e   :  { %p797_p4 = pnand %p796_p3, %p790_p0 }
 0x455   :  { %v405_v16 = vpop.f32.mrb[6].mxu0 }
 0x456   :  { %v704_v20 = vpop.f32.mrb[7].mxu0 }
 0x45b   :  { %v475_v24 = vpop.f32.mrb[8].mxu0 }
 0x45c   :  { %481 = vperm.xlu0 %773, %v475_v24   ;;  %v713_v35 = vpop.f32.mrb[9].mxu0 }
 0x4db   :  { %v482_v59 = vpop.permute.xlu0 %481 }
 0x4dc   :  { %787 = vrcp.f32 %v482_v59 }
 0x4e6   :  { %v788_v60 = vpop.eup %787 }
 0x4e7   :  { %v485_v61 = vmul.f32 %v788_v60, %v405_v16 }
 0x4e9   :  { %723 = vmatmul.mubr.msk.f32.vlgmr.msra.gmra.mrb[10].mxu0 %vm48_vm1, %v485_v61 }
 0x5bc   :  { %v566_v62 = vpop.f32.mrb[10].mxu0 }
 0x5bd   :  { %v567_v63 = vadd.f32 %v597_v3, %v566_v62  ;;  %v724_v0 = vpop.f32.mrb[11].mxu0 }
 0x5bf   :  { %571 = vst.msk [vmem:[#allocation2] sm:$0x7] %vm570_vm12, %v567_v63 }
 0x5c0   :  { %800 = shalt.err (!%p797_p4)
}
 0x5c1   :  { %s801_s22 = scalar_lea.hbm %s1069_s8, 64 }
 0x5c2   :  { %p802_p5 = scmp.ne.s32.totalorder %s1069_s8, %s801_s22  ;;  %p805_p6 = scmp.lt.u32.totalorder %s801_s22, %s1069_s8 }
 0x5c4   :  { %p807_p7 = pnand %p805_p6, %p802_p5 }
 0x5c6   :  { %810 = shalt.err (!%p807_p7)
}
 0x5c7   :  { %581 = dma.vmem_to_hbm [thread:$0]  %s579_s19, 64, %s1069_s8, [#allocation3]  }
 0x5c8   :  { %811 = dma.done.wait [#allocation3], 64  }
 0x5c9   :  { %812 = vsyncadd [#allocation3], 4294967232 }
 0x5ca   :  { %585 = vsyncpa [#allocation3], 1 }

</bundles_post_ra>
